<compile_context>
chip_gen: v6e
topology: v6e:2x2x1
jax: 0.10.0
libtpu: 0.0.40
codegen_flags: <defaults>
</compile_context>

<pallas_src>
import jax
import jax.numpy as jnp
from jax.experimental import pallas as pl
from jax.experimental.pallas import tpu as pltpu


# ----------------------------- helpers ---------------------------------------

def _round_up(x, m):
    return (x + m - 1) // m * m


_INV_SQRT2 = 0.7071067811865476


def _resident_spec(shape):
    """Full-array, grid-invariant BlockSpec; single-buffered when supported."""
    index_map = lambda i: (0,) * len(shape)
    try:
        return pl.BlockSpec(shape, index_map, pipeline_mode=pl.Buffered(1))
    except (TypeError, AttributeError):
        # Older Pallas without pipeline_mode/Buffered: fall back to default
        # (double-buffered) resident spec.
        return pl.BlockSpec(shape, index_map)


# ----------------------------- Pallas kernel ---------------------------------

def _fused_mlp_kernel(x_ref, w1_ref, b1_ref, w2_ref, b2_ref, o_ref):
    """One row-tile of the MLP: (tm, K) -> (tm, Kp); hidden never leaves VMEM."""
    # bf16 operands -> native MXU path; f32 accumulation preserved.
    x = x_ref[...].astype(jnp.bfloat16)

    # Linear 1 + bias (bias add in f32).
    h = jnp.dot(x, w1_ref[...], preferred_element_type=jnp.float32) + b1_ref[...]

    # Exact (erf-based) GELU in f32 — matches torch.nn.GELU() default.
    # (tanh-approx/EUP variant only if profiling shows VALU as the binding slot.)
    h = 0.5 * h * (1.0 + jax.lax.erf(h * _INV_SQRT2))

    # TODO(synk): training-mode Dropout (pltpu.prng_seed / prng_random_bits) not
    # implemented; eval-mode Dropout is the identity.

    # Linear 2 + bias (bf16 operands, f32 accumulation, f32 bias add).
    out = jnp.dot(h.astype(jnp.bfloat16), w2_ref[...],
                  preferred_element_type=jnp.float32) + b2_ref[...]
    o_ref[...] = out.astype(o_ref.dtype)


# ----------------------------- wrapper ----------------------------------------

def mlp_forward(x, w1, b1, w2, b2, *, block_rows=512,
                vmem_budget_bytes=48 * 1024 * 1024):
    """Fused MLP forward.

    x  : (..., in_c)
    w1 : (in_c, hid)   -- transpose of PyTorch nn.Linear weight (out, in)
    b1 : (hid,)
    w2 : (hid, in_c)
    b2 : (in_c,)
    """
    *lead, K = x.shape
    H = w1.shape[1]

    # Lane-dense output: pad output feature dim (W2 cols, b2) to a multiple of
    # 128 so stores are unmasked full-lane writes; padded cols are exact zeros.
    Kp = _round_up(K, 128)
    if Kp != K:
        w2 = jnp.pad(w2, ((0, 0), (0, Kp - K)))
        b2 = jnp.pad(b2, (0, Kp - K))

    # Resident weights in bf16 (halves weight VMEM/HBM traffic).
    w1b = w1.astype(jnp.bfloat16)
    w2b = w2.astype(jnp.bfloat16)

    x2d = x.reshape(-1, K)
    M = x2d.shape[0]

    # ---- row tile size (VMEM-budget aware) -----------------------------------
    # Resident bytes: single-buffered bf16 weights + f32 biases.
    resident = (K * H + H * Kp) * 2 + (H + Kp) * 4
    # Per-row bytes: double-buffered x/out f32 tiles + f32 hidden + bf16 hidden.
    per_row = 2 * K * 4 + 2 * Kp * 4 + H * (4 + 2)
    # TODO(synk): if `resident` alone exceeds the budget (very large in_c), a
    # hidden-dim "arbitrary" grid axis with an f32 accumulator would be needed.
    tm_budget = max(8, ((vmem_budget_bytes - resident) // max(per_row, 1)) // 8 * 8)
    tm = min(tm_budget, block_rows, _round_up(M, 8))
    if M > 8:
        # v7x megacore: ensure >= 2 grid steps so both TensorCores get rows
        # (harmless on single-core v5e/v6e).
        tm = min(tm, _round_up(pl.cdiv(M, 2), 8))
    tm = max(8, tm // 8 * 8)

    grid = (pl.cdiv(M, tm),)   # ragged tail handled by Pallas; no row padding

    vmem_limit = int(min(max(int((resident + per_row * tm) * 1.5) + (4 << 20),
                             32 * 1024 * 1024),
                         64 * 1024 * 1024))

    out = pl.pallas_call(
        _fused_mlp_kernel,
        grid=grid,
        in_specs=[
            pl.BlockSpec((tm, K), lambda i: (i, 0)),   # x row tile (pipelined)
            _resident_spec((K, H)),                    # W1 (bf16, resident)
            _resident_spec((1, H)),                    # b1 (f32)
            _resident_spec((H, Kp)),                   # W2 (bf16, resident)
            _resident_spec((1, Kp)),                   # b2 (f32)
        ],
        out_specs=pl.BlockSpec((tm, Kp), lambda i: (i, 0)),
        out_shape=jax.ShapeDtypeStruct((M, Kp), x.dtype),
        compiler_params=pltpu.CompilerParams(
            dimension_semantics=("parallel",),
            vmem_limit_bytes=vmem_limit),
    )(x2d, w1b, b1.reshape(1, H), w2b, b2.reshape(1, Kp))

    if Kp != K:
        out = out[:, :K]
    return out.reshape(*lead, K)


# ----------------------------- parameters ------------------------------------

def init_mlp_params(key, in_c, up_scale=4):
    """PyTorch nn.Linear-style init, stored as (in, out) for the kernel."""
    hid = in_c * up_scale
    k1, k2, k3, k4 = jax.random.split(key, 4)
    bound1 = 1.0 / (in_c ** 0.5)
    bound2 = 1.0 / (hid ** 0.5)
    w1 = jax.random.uniform(k1, (in_c, hid), jnp.float32, -bound1, bound1)
    b1 = jax.random.uniform(k2, (hid,), jnp.float32, -bound1, bound1)
    w2 = jax.random.uniform(k3, (hid, in_c), jnp.float32, -bound2, bound2)
    b2 = jax.random.uniform(k4, (in_c,), jnp.float32, -bound2, bound2)
    return w1, b1, w2, b2


# ----------------------------- main -------------------------------------------

if __name__ == "__main__":
    in_c, up_scale = 64, 4          # hidden = 256
    B, S = 2, 8                     # rows = B*S = 16

    key = jax.random.PRNGKey(0)
    k_param, k_x = jax.random.split(key)
    w1, b1, w2, b2 = init_mlp_params(k_param, in_c, up_scale)
    x = jax.random.normal(k_x, (B, S, in_c), jnp.float32)

    fwd = jax.jit(mlp_forward)
    out = fwd(x, w1, b1, w2, b2)
    jax.block_until_ready(out)

    # Pure-JAX f32 reference (eval-mode dropout = identity).  Tolerance is
    # loosened vs the f32 kernel because MXU operands are bf16 (explicit
    # perf/precision trade-off); accumulation remains f32.
    h_ref = jnp.dot(x, w1, precision=jax.lax.Precision.HIGHEST) + b1
    h_ref = 0.5 * h_ref * (1.0 + jax.lax.erf(h_ref * _INV_SQRT2))
    ref = jnp.dot(h_ref, w2, precision=jax.lax.Precision.HIGHEST) + b2

    assert out.shape == (B, S, in_c)
    assert bool(jnp.all(jnp.isfinite(out)))
    max_err = float(jnp.max(jnp.abs(out - ref)))
    assert bool(jnp.allclose(out, ref, rtol=2e-2, atol=2e-2)), max_err
    print("KERNEL_OK")
</pallas_src>

<mosaic_0001>
module attributes {stable_mosaic.version = 11 : i64} {
  func.func @_fused_mlp_kernel(%arg0: i32, %arg1: memref<8x64xf32, #tpu.memory_space<vmem>>, %arg2: memref<64x256xbf16, #tpu.memory_space<vmem>>, %arg3: memref<1x256xf32, #tpu.memory_space<vmem>>, %arg4: memref<256x128xbf16, #tpu.memory_space<vmem>>, %arg5: memref<1x128xf32, #tpu.memory_space<vmem>>, %arg6: memref<8x128xf32, #tpu.memory_space<vmem>>) attributes {dimension_semantics = [#tpu.dimension_semantics<parallel>], iteration_bounds = array<i64: 2>, scalar_prefetch = 0 : i64, scratch_operands = 0 : i64, tpu.core_type = #tpu.core_type<tc>, window_params = [{transform_indices = @transform_0, window_bounds = array<i64: 8, 64>}, {pipeline_mode = #tpu.pipeline_mode<synchronous>, transform_indices = @transform_1, window_bounds = array<i64: 64, 256>}, {pipeline_mode = #tpu.pipeline_mode<synchronous>, transform_indices = @transform_2, window_bounds = array<i64: 1, 256>}, {pipeline_mode = #tpu.pipeline_mode<synchronous>, transform_indices = @transform_3, window_bounds = array<i64: 256, 128>}, {pipeline_mode = #tpu.pipeline_mode<synchronous>, transform_indices = @transform_4, window_bounds = array<i64: 1, 128>}, {transform_indices = @transform_5, window_bounds = array<i64: 8, 128>}]} {
    %c0 = arith.constant 0 : index
    %c0_0 = arith.constant 0 : index
    %0 = vector.load %arg1[%c0, %c0_0] : memref<8x64xf32, #tpu.memory_space<vmem>>, vector<8x64xf32>
    %1 = arith.truncf %0 : vector<8x64xf32> to vector<8x64xbf16>
    %c0_1 = arith.constant 0 : index
    %c0_2 = arith.constant 0 : index
    %2 = vector.load %arg2[%c0_1, %c0_2] : memref<64x256xbf16, #tpu.memory_space<vmem>>, vector<64x256xbf16>
    %cst = arith.constant dense<0.000000e+00> : vector<8x256xf32>
    %3 = tpu.matmul %1, %2, %cst {dimension_numbers = #tpu.dot_dimension_numbers<[1], [0], [0], [1], [0, 0, 1, 1], [], []>} : vector<8x64xbf16>, vector<64x256xbf16>, vector<8x256xf32> -> vector<8x256xf32>
    %c0_3 = arith.constant 0 : index
    %c0_4 = arith.constant 0 : index
    %4 = vector.load %arg3[%c0_3, %c0_4] : memref<1x256xf32, #tpu.memory_space<vmem>>, vector<1x256xf32>
    %5 = vector.broadcast %4 : vector<1x256xf32> to vector<8x256xf32>
    %6 = arith.addf %3, %5 : vector<8x256xf32>
    %cst_5 = arith.constant 5.000000e-01 : f32
    %7 = vector.broadcast %cst_5 : f32 to vector<8x256xf32>
    %8 = arith.mulf %7, %6 : vector<8x256xf32>
    %cst_6 = arith.constant 0.707106769 : f32
    %9 = vector.broadcast %cst_6 : f32 to vector<8x256xf32>
    %10 = arith.mulf %6, %9 : vector<8x256xf32>
    %11 = math.erf %10 : vector<8x256xf32>
    %cst_7 = arith.constant 1.000000e+00 : f32
    %12 = vector.broadcast %cst_7 : f32 to vector<8x256xf32>
    %13 = arith.addf %12, %11 : vector<8x256xf32>
    %14 = arith.mulf %8, %13 : vector<8x256xf32>
    %15 = arith.truncf %14 : vector<8x256xf32> to vector<8x256xbf16>
    %c0_8 = arith.constant 0 : index
    %c0_9 = arith.constant 0 : index
    %16 = vector.load %arg4[%c0_8, %c0_9] : memref<256x128xbf16, #tpu.memory_space<vmem>>, vector<256x128xbf16>
    %cst_10 = arith.constant dense<0.000000e+00> : vector<8x128xf32>
    %17 = tpu.matmul %15, %16, %cst_10 {dimension_numbers = #tpu.dot_dimension_numbers<[1], [0], [0], [1], [0, 0, 1, 1], [], []>} : vector<8x256xbf16>, vector<256x128xbf16>, vector<8x128xf32> -> vector<8x128xf32>
    %c0_11 = arith.constant 0 : index
    %c0_12 = arith.constant 0 : index
    %18 = vector.load %arg5[%c0_11, %c0_12] : memref<1x128xf32, #tpu.memory_space<vmem>>, vector<1x128xf32>
    %19 = vector.broadcast %18 : vector<1x128xf32> to vector<8x128xf32>
    %20 = arith.addf %17, %19 : vector<8x128xf32>
    %c0_13 = arith.constant 0 : index
    %c0_14 = arith.constant 0 : index
    %21 = vector.load %arg6[%c0_13, %c0_14] : memref<8x128xf32, #tpu.memory_space<vmem>>, vector<8x128xf32>
    tpu.vector_store %arg6[%c0_13, %c0_14], %20 {strides = array<i32>} : memref<8x128xf32, #tpu.memory_space<vmem>>, vector<8x128xf32>,
    return
  }
  func.func @transform_0(%arg0: i32) -> (i32, i32) {
    %c0_i32 = arith.constant 0 : i32
    %c0_i32_0 = arith.constant 0 : i32
    return %arg0, %c0_i32 : i32, i32
  }
  func.func @transform_1(%arg0: i32) -> (i32, i32) {
    %c0_i32 = arith.constant 0 : i32
    %c0_i32_0 = arith.constant 0 : i32
    %c0_i32_1 = arith.constant 0 : i32
    return %c0_i32, %c0_i32_0 : i32, i32
  }
  func.func @transform_2(%arg0: i32) -> (i32, i32) {
    %c0_i32 = arith.constant 0 : i32
    %c0_i32_0 = arith.constant 0 : i32
    %c0_i32_1 = arith.constant 0 : i32
    return %c0_i32, %c0_i32_0 : i32, i32
  }
  func.func @transform_3(%arg0: i32) -> (i32, i32) {
    %c0_i32 = arith.constant 0 : i32
    %c0_i32_0 = arith.constant 0 : i32
    %c0_i32_1 = arith.constant 0 : i32
    return %c0_i32, %c0_i32_0 : i32, i32
  }
  func.func @transform_4(%arg0: i32) -> (i32, i32) {
    %c0_i32 = arith.constant 0 : i32
    %c0_i32_0 = arith.constant 0 : i32
    %c0_i32_1 = arith.constant 0 : i32
    return %c0_i32, %c0_i32_0 : i32, i32
  }
  func.func @transform_5(%arg0: i32) -> (i32, i32) {
    %c0_i32 = arith.constant 0 : i32
    %c0_i32_0 = arith.constant 0 : i32
    return %arg0, %c0_i32 : i32, i32
  }
}

</mosaic_0001>

<bundles_post_ra>
// kernel: mlp_forward.1
= control target key start
LH: loop header
LB: loop body
LE: loop exit
PB: predicated region body
PF: predicated region fallthrough
CT: control target
= control target key end

     0   :  { %s706_s18 = smov 0   ;;  %s808_s0 = inlined_call_operand.vmem [shape: f32[16,64], index: 0, kind: input, shape index: {}]   ;;  %s809_s1 = inlined_call_operand.vmem [shape: bf16[64,256], index: 1, kind: input, shape index: {}]   ;;  %s810_s2 = inlined_call_operand.vmem [shape: f32[1,256], index: 2, kind: input, shape index: {}]   ;;  %s811_s3 = inlined_call_operand.vmem [shape: bf16[256,128], index: 3, kind: input, shape index: {}]   ;;  %s812_s4 = inlined_call_operand.vmem [shape: f32[1,128], index: 4, kind: input, shape index: {}]   ;;  %s813_s5 = inlined_call_operand.vmem [shape: f32[16,128], index: 5, kind: output, shape index: {}]  }
   0x1 LB: > { %s569_s19 = sadd.s32 4294967295, %s673_s18   ;;  %p573_p0 = scmp.ge.s32.totalorder %s673_s18, 1  ;;  %s673_s18 = sphi %s706_s18, %s15_s18  }
   0x2   : > { %p186_p1 = scmp.lt.s32.totalorder %s673_s18, 3 }
   0x4   : > { %p187_p2 = pnand %p573_p0, %p186_p1 }
   0x5   : > { %p212_p3 = scmp.lt.s32.totalorder (!%p187_p2), %s569_s19, 1 }
   0x6   : > { %190 = sbr.rel (%p187_p2) target bundleno = 448 (0x1c0), region = 40 }
   0xb   : > { %v635_v0 = vld [vmem:[%s809_s1 + $0x34] ss:$8 sps:$4 sm:$0xff]   ;;  %v637_v1 = vld [vmem:[%s809_s1 + $0x30] ss:$8 sps:$4 sm:$0xff]   ;;  %v675_v2 = vmov 0   ;;  %s815_s19 = smov (!%p212_p3, %s569_s19), 1  ;;  %v233_v27 = vlaneseq }
   0xc   : > { %319 = vmatprep.mubr.bf16.mxu0 %v675_v2  ;;  %295 = vmatprep.subr.bf16.mxu0 %v635_v0  ;;  %v638_v3 = vld [vmem:[%s809_s1 + $0x24] ss:$8 sps:$4 sm:$0xff]   ;;  %v640_v4 = vld [vmem:[%s809_s1 + $0x20] ss:$8 sps:$4 sm:$0xff]   ;;  %v641_v5 = vld [vmem:[%s809_s1 + $0x14] ss:$8 sps:$4 sm:$0xff]  }
   0xd   : > { %296 = vmatpush1.bf16.msra.mxu0 %v637_v1  ;;  %s574_s30 = sshll.u32 %s815_s19, 3  ;;  %v643_v6 = vld [vmem:[%s809_s1 + $0x10] ss:$8 sps:$4 sm:$0xff]   ;;  %v644_v8 = vld [vmem:[%s809_s1 + $0x4] ss:$8 sps:$4 sm:$0xff]   ;;  %vm283_vm0 = vcmask 523264  }
   0xe   : > { %297 = vmatprep.subr.bf16.mxu0 %v638_v3  ;;  %s215_s10 = scalar_lea.vmem %s808_s0, %s574_s30  ;;  %v647_v7 = vld [vmem:[%s811_s3 + $0x78] sm:$0xff]   ;;  %v646_v10 = vld [vmem:[%s809_s1] ss:$8 sps:$4 sm:$0xff]   ;;  %v649_v13 = vld [vmem:[%s811_s3 + $0x70] sm:$0xff]   ;;  %v234_v28 = vshrl.u32 %v233_v27, 7  ;;  %s219_s9 = scalar_lea.vmem %s813_s5, %s574_s30 }
   0xf   : > { %v648_v9 = vld [vmem:[%s811_s3 + $0x38] sm:$0xff]   ;;  %604 = vmatprep.subr.bf16.mxu1 %v647_v7  ;;  %v221_v11 = vld [vmem:[%s215_s10] sm:$0xff]  ;;  %v650_v14 = vld [vmem:[%s811_s3 + $0x30] sm:$0xff]  }
  0x10   : > { %605 = vmatpush3.bf16.msra.mxu1 %v648_v9  ;;  %v222_v12 = vpack.c.bf16 %v221_v11, %v221_v11  ;;  %v651_v15 = vld [vmem:[%s811_s3 + $0x68] sm:$0xff]   ;;  %v653_v17 = vld [vmem:[%s811_s3 + $0x60] sm:$0xff]   ;;  %v655_v19 = vld [vmem:[%s811_s3 + $0x58] sm:$0xff]   ;;  %v235_v29 = vsub.s32 0, %v234_v28  ;;  %v239_v31 = vsub.s32 1, %v234_v28 }
  0x11   : > { %298 = vmatpush1.bf16.msra.mxu0 %v640_v4  ;;  %606 = vmatprep.subr.bf16.mxu1 %v649_v13  ;;  %v652_v16 = vld [vmem:[%s811_s3 + $0x28] sm:$0xff]   ;;  %v654_v18 = vld [vmem:[%s811_s3 + $0x20] sm:$0xff]   ;;  %v656_v20 = vld [vmem:[%s811_s3 + $0x18] sm:$0xff]  }
  0x12   : > { %299 = vmatprep.subr.bf16.mxu0 %v641_v5  ;;  %v657_v21 = vld [vmem:[%s811_s3 + $0x50] sm:$0xff]   ;;  %v659_v23 = vld [vmem:[%s811_s3 + $0x48] sm:$0xff]   ;;  %v661_v25 = vld [vmem:[%s811_s3 + $0x40] sm:$0xff]  }
  0x13   : > { %v658_v22 = vld [vmem:[%s811_s3 + $0x10] sm:$0xff]   ;;  %v660_v24 = vld [vmem:[%s811_s3 + $0x8] sm:$0xff]   ;;  %v662_v26 = vld [vmem:[%s811_s3] sm:$0xff]  }
  0x14   : > { %607 = vmatpush3.bf16.msra.mxu1 %v650_v14  ;;  %v231_v30 = vld [vmem:[%s810_s2] sm:$0x3] }
  0x15   : > { %300 = vmatpush1.bf16.msra.mxu0 %v643_v6  ;;  %608 = vmatprep.subr.bf16.mxu1 %v651_v15  ;;  %v236_v32 = vrot.slane %v231_v30, %v235_v29  ;;  %v240_v33 = vrot.slane %v231_v30, %v239_v31  ;;  %v585_v53 = vld [vmem:[%s812_s4] ss:$0 sm:$0xff] }
  0x16   : > { %301 = vmatprep.subr.bf16.mxu0 %v644_v8 }
  0x18   : > { %609 = vmatpush3.bf16.msra.mxu1 %v652_v16 }
  0x19   : > { %302 = vmatpush1.bf16.msra.mxu0 %v646_v10  ;;  %610 = vmatprep.subr.bf16.mxu1 %v653_v17 }
  0x1c   : > { %584 = vmatmul.mubr.msk.bf16.vlgmr.msra.gmra.mxu0 %vm283_vm0, %v222_v12  ;;  %611 = vmatpush3.bf16.msra.mxu1 %v654_v18 }
  0x1d   : > { %612 = vmatprep.subr.bf16.mxu1 %v655_v19 }
  0x20   : > { %613 = vmatpush3.bf16.msra.mxu1 %v656_v20 }
  0x21   : > { %614 = vmatprep.subr.bf16.mxu1 %v657_v21 }
  0x24   : > { %615 = vmatpush3.bf16.msra.mxu1 %v658_v22 }
  0x25   : > { %616 = vmatprep.subr.bf16.mxu1 %v659_v23 }
  0x28   : > { %617 = vmatpush3.bf16.msra.mxu1 %v660_v24 }
  0x29   : > { %618 = vmatprep.subr.bf16.mxu1 %v661_v25 }
  0x2c   : > { %619 = vmatpush3.bf16.msra.mxu1 %v662_v26 }
  0xdc   : > { %v321_v34 = vpop.f32.mrf.mxu0 }
  0xdd   : > { %v322_v35 = vadd.f32 %v321_v34, %v236_v32 }
  0xde   : > { %v323_v36 = vpop.f32.mrf.mxu0 }
  0xdf   : > { %v330_v37 = vmul.f32 0.70710677, %v322_v35  ;;  %v324_v38 = vadd.f32 %v323_v36, %v240_v33  ;;  %v328_v45 = vmul.f32 0.5, %v322_v35 }
  0xe0   : > { %v325_v39 = vpop.f32.mrf.mxu0 }
  0xe1   : > { %663 = verf.f32 %v330_v37  ;;  %v331_v40 = vmul.f32 0.70710677, %v324_v38  ;;  %v329_v46 = vmul.f32 0.5, %v324_v38 }
  0xe2   : > { %v326_v41 = vpop.f32.mrf.mxu0 }
  0xe3   : > { %665 = verf.f32 %v331_v40 }
  0xee   : > { %v664_v42 = vpop.eup %663 }
  0xef   : > { %v334_v43 = vadd.f32 1.0, %v664_v42 }
  0xf0   : > { %v666_v44 = vpop.eup %665 }
  0xf1   : > { %v335_v47 = vadd.f32 1.0, %v666_v44  ;;  %v336_v48 = vmul.f32 %v334_v43, %v328_v45 }
  0xf3   : > { %v337_v49 = vmul.f32 %v335_v47, %v329_v46  ;;  %v338_v51 = vpack.c.bf16 %v336_v48, %v336_v48 }
  0xf5   : > { %v339_v50 = vpack.c.bf16 %v337_v49, %v337_v49 }
  0xf7   : > { %507 = vmatprep.mubr.bf16.mxu1 %v339_v50 }
  0xf8   : > { %508 = vmatmul.mubr.bf16.vlgmr.msra.gmra.mxu1 %v338_v51 }
 0x1b8   : > { %v620_v52 = vpop.f32.mrf.mxu1 }
 0x1ba   : > { %v621_v54 = vpop.f32.mrf.mxu1 }
 0x1bb   : > { %v622_v55 = vadd.f32 %v621_v54, %v620_v52 }
 0x1bc   : > { %v623_v56 = vpop.f32.mrf.mxu1 }
 0x1bd   : > { %v510_v57 = vadd.f32 %v622_v55, %v585_v53 }
 0x1be   : > { %v624_v58 = vpop.f32.mrf.mxu1 }
 0x1bf   : > { %515 = vst [vmem:[%s219_s9] sm:$0xff] %v510_v57 }
 0x1c0 PF: > { %s15_s18 = sadd.s32 1, %s673_s18  }
 0x1c1   : > { %p12_p4 = scmp.ge.s32.totalorder %s15_s18, 4  }
 0x1c3   :  { %14 = sbr.rel (!%p12_p4) target bundleno = 1 (0x1), region = 70 }

</bundles_post_ra>
